<compile_context>
chip_gen: v7x
topology: tpu7x:2x2x1
jax: 0.10.0
libtpu: 0.0.40
codegen_flags: <defaults>
</compile_context>

<pallas_src>
import functools

import jax
import jax.numpy as jnp
from jax.experimental import pallas as pl
from jax.experimental.pallas import tpu as pltpu

SOFTMAX_TEMPERATURE = 0.07
INV_TEMPERATURE = 1.0 / SOFTMAX_TEMPERATURE


def _ce_kernel(x_ref, out_ref, *, batch, block_rows, mask_rows):
    i = pl.program_id(0)

    @pl.when(i == 0)
    def _():
        out_ref[0, 0] = jnp.float32(0.0)

    # Row tile (TM, B): x = matrix / T via a single multiply.
    x = x_ref[...].astype(jnp.float32) * jnp.float32(INV_TEMPERATURE)
    ncols = x.shape[1]

    # Per-row logsumexp (numerically stable).
    row_max = jnp.max(x, axis=1, keepdims=True)                       # (TM, 1)
    lse = row_max + jnp.log(
        jnp.sum(jnp.exp(x - row_max), axis=1, keepdims=True))         # (TM, 1)

    # Diagonal element per row: column index == global row index
    # (= i * TM + local row).  Select + lane-reduce over the tile we already
    # hold in VMEM -- no second DMA stream needed.
    rr = jax.lax.broadcasted_iota(jnp.int32, (block_rows, ncols), 0)
    cc = jax.lax.broadcasted_iota(jnp.int32, (block_rows, ncols), 1)
    diag_mask = cc == (i * block_rows + rr)
    diag = jnp.sum(jnp.where(diag_mask, x, 0.0), axis=1, keepdims=True)

    per_row = lse - diag                      # (TM, 1) == -logp[g, g]

    if mask_rows:
        # Last block may run past B: drop out-of-range (garbage) rows.
        local = jax.lax.broadcasted_iota(jnp.int32, (block_rows, 1), 0)
        valid = (i * block_rows + local) < batch
        per_row = jnp.where(valid, per_row, 0.0)

    out_ref[0, 0] += jnp.sum(per_row) * jnp.float32(1.0 / batch)


def _choose_block_rows(batch, ncols, itemsize):
    # Small matrices: one block whose dims equal the full array dims (always
    # satisfies the (8, 128) tiling rule, even for odd B).
    if batch <= 512:
        return batch
    # Tiled case: keep the double-buffered row stream under ~8 MiB so even
    # v5e's 16 MiB default scoped-VMEM limit is never hit.
    budget = 8 * 1024 * 1024
    for tm in (512, 256, 128):
        if 2 * tm * ncols * itemsize <= budget:
            return tm
    return 128


def matrix_softmax_ce_loss(matrix: jax.Array) -> jax.Array:
    """Pallas implementation of MatrixSoftmaxCELoss.forward.

    Args:
      matrix: [B, B] similarity matrix (float32 or bfloat16).
    Returns:
      scalar float32 loss.
    """
    B, C = matrix.shape
    tm = _choose_block_rows(B, C, jnp.dtype(matrix.dtype).itemsize)
    grid = (pl.cdiv(B, tm),)
    mask_rows = (B % tm) != 0

    kernel = functools.partial(
        _ce_kernel, batch=B, block_rows=tm, mask_rows=mask_rows)

    out = pl.pallas_call(
        kernel,
        out_shape=jax.ShapeDtypeStruct((1, 1), jnp.float32),
        grid=grid,
        in_specs=[
            pl.BlockSpec((tm, C), lambda i: (i, 0)),    # full rows -> lse+diag
        ],
        out_specs=pl.BlockSpec((1, 1), lambda i: (0, 0),
                               memory_space=pltpu.MemorySpace.SMEM),
        compiler_params=pltpu.CompilerParams(
            dimension_semantics=("arbitrary",)),
    )(matrix)
    return out[0, 0]


def _reference(matrix: jax.Array) -> jax.Array:
    # Pure-JAX reference mirroring the (surviving) PyTorch code path.
    x = matrix.astype(jnp.float32) / SOFTMAX_TEMPERATURE
    row_logp = jax.nn.log_softmax(x, axis=1)
    B = matrix.shape[0]
    idx = jnp.arange(B)
    nll = -jnp.mean(row_logp[idx, idx])
    return jnp.sum(nll)


if __name__ == "__main__":
    key = jax.random.PRNGKey(0)
    k0, k1 = jax.random.split(key)

    # Small single-block case (B x B similarity matrix, batch = 8).
    B = 8
    matrix = jax.random.normal(k0, (B, B), dtype=jnp.float32)
    loss = jax.block_until_ready(matrix_softmax_ce_loss(matrix))
    ref = _reference(matrix)
    assert jnp.allclose(loss, ref, rtol=1e-4, atol=1e-4), (loss, ref)

    # Tiled multi-step case with a ragged last row block: exercises the
    # grid > 1 path, row masking and SMEM accumulation across steps.
    B2 = 640
    matrix2 = jax.random.normal(k1, (B2, B2), dtype=jnp.float32)
    loss2 = jax.block_until_ready(matrix_softmax_ce_loss(matrix2))
    ref2 = _reference(matrix2)
    assert jnp.allclose(loss2, ref2, rtol=1e-4, atol=1e-4), (loss2, ref2)

    print("KERNEL_OK")
</pallas_src>

<mosaic_0001>
module attributes {stable_mosaic.version = 11 : i64} {
  func.func @_ce_kernel(%arg0: i32, %arg1: memref<8x8xf32, #tpu.memory_space<vmem>>, %arg2: memref<1x1xf32, #tpu.memory_space<smem>>) attributes {dimension_semantics = [#tpu.dimension_semantics<arbitrary>], iteration_bounds = array<i64: 1>, scalar_prefetch = 0 : i64, scratch_operands = 0 : i64, tpu.core_type = #tpu.core_type<tc>, window_params = [{transform_indices = @transform_0, window_bounds = array<i64: 8, 8>}, {transform_indices = @transform_1, window_bounds = array<i64: 1, 1>}]} {
    %c0_i32 = arith.constant 0 : i32
    %0 = arith.cmpi eq, %arg0, %c0_i32 : i32
    %1 = arith.extui %0 : i1 to i32
    %c0_i32_0 = arith.constant 0 : i32
    %2 = arith.cmpi ne, %1, %c0_i32_0 : i32
    scf.if %2 {
      %cst_12 = arith.constant 0.000000e+00 : f32
      %c0_13 = arith.constant 0 : index
      %c0_14 = arith.constant 0 : index
      %34 = memref.load %arg2[%c0_13, %c0_14] : memref<1x1xf32, #tpu.memory_space<smem>>
      memref.store %cst_12, %arg2[%c0_13, %c0_14] : memref<1x1xf32, #tpu.memory_space<smem>>
    } else {
    }
    %c0 = arith.constant 0 : index
    %c0_1 = arith.constant 0 : index
    %3 = vector.load %arg1[%c0, %c0_1] : memref<8x8xf32, #tpu.memory_space<vmem>>, vector<8x8xf32>
    %cst = arith.constant 14.2857141 : f32
    %4 = vector.broadcast %cst : f32 to vector<8x8xf32>
    %5 = arith.mulf %3, %4 : vector<8x8xf32>
    %cst_2 = arith.constant dense<0xFF800000> : vector<8xf32>
    %6 = vector.multi_reduction <maximumf>, %5, %cst_2 [1] : vector<8x8xf32> to vector<8xf32>
    %7 = vector.shape_cast %6 : vector<8xf32> to vector<8x1xf32>
    %8 = vector.broadcast %7 : vector<8x1xf32> to vector<8x8xf32>
    %9 = arith.subf %5, %8 : vector<8x8xf32>
    %10 = math.exp %9 : vector<8x8xf32>
    %cst_3 = arith.constant dense<0.000000e+00> : vector<8xf32>
    %11 = vector.multi_reduction <add>, %10, %cst_3 [1] : vector<8x8xf32> to vector<8xf32>
    %12 = vector.shape_cast %11 : vector<8xf32> to vector<8x1xf32>
    %13 = math.log %12 : vector<8x1xf32>
    %14 = arith.addf %7, %13 : vector<8x1xf32>
    %15 = tpu.iota {dimensions = array<i32: 0>} : vector<8x8xi32>
    %16 = tpu.iota {dimensions = array<i32: 1>} : vector<8x8xi32>
    %c8_i32 = arith.constant 8 : i32
    %17 = arith.muli %arg0, %c8_i32 : i32
    %18 = vector.broadcast %17 : i32 to vector<8x8xi32>
    %19 = arith.addi %18, %15 : vector<8x8xi32>
    %20 = arith.cmpi eq, %16, %19 : vector<8x8xi32>
    %cst_4 = arith.constant 0.000000e+00 : f32
    %21 = vector.broadcast %cst_4 : f32 to vector<8x8xf32>
    %22 = arith.select %20, %5, %21 : vector<8x8xi1>, vector<8x8xf32>
    %cst_5 = arith.constant dense<0.000000e+00> : vector<8xf32>
    %23 = vector.multi_reduction <add>, %22, %cst_5 [1] : vector<8x8xf32> to vector<8xf32>
    %24 = vector.shape_cast %23 : vector<8xf32> to vector<8x1xf32>
    %25 = arith.subf %14, %24 : vector<8x1xf32>
    %c0_6 = arith.constant 0 : index
    %c0_7 = arith.constant 0 : index
    %26 = memref.load %arg2[%c0_6, %c0_7] : memref<1x1xf32, #tpu.memory_space<smem>>
    %27 = vector.shape_cast %25 : vector<8x1xf32> to vector<1x8x1xf32>
    %cst_8 = arith.constant dense<0.000000e+00> : vector<1xf32>
    %28 = vector.multi_reduction <add>, %27, %cst_8 [1, 2] : vector<1x8x1xf32> to vector<1xf32>
    %29 = vector.shape_cast %28 : vector<1xf32> to vector<1x1x1xf32>
    %30 = vector.extract %29[0, 0, 0] : f32 from vector<1x1x1xf32>
    %cst_9 = arith.constant 1.250000e-01 : f32
    %31 = arith.mulf %30, %cst_9 : f32
    %32 = arith.addf %26, %31 : f32
    %c0_10 = arith.constant 0 : index
    %c0_11 = arith.constant 0 : index
    %33 = memref.load %arg2[%c0_10, %c0_11] : memref<1x1xf32, #tpu.memory_space<smem>>
    memref.store %32, %arg2[%c0_10, %c0_11] : memref<1x1xf32, #tpu.memory_space<smem>>
    return
  }
  func.func @transform_0(%arg0: i32) -> (i32, i32) {
    %c0_i32 = arith.constant 0 : i32
    %c0_i32_0 = arith.constant 0 : i32
    return %arg0, %c0_i32 : i32, i32
  }
  func.func @transform_1(%arg0: i32) -> (i32, i32) {
    %c0_i32 = arith.constant 0 : i32
    %c0_i32_0 = arith.constant 0 : i32
    %c0_i32_1 = arith.constant 0 : i32
    return %c0_i32, %c0_i32_0 : i32, i32
  }
}

</mosaic_0001>

<bundles_post_ra>
// kernel: tpu_custom_call.1
= control target key start
LH: loop header
LB: loop body
LE: loop exit
PB: predicated region body
PF: predicated region fallthrough
CT: control target
= control target key end

     0   :  { %6 = vsyncpa [#allocation3], 0  ;;  %s169_s0 = inlined_call_operand.hbm [shape: f32[8,8], index: 0, kind: input, shape index: {}]   ;;  %s170_s1 = inlined_call_operand.hbm [shape: f32[1,1], index: 1, kind: output, shape index: {}]  }
   0x1   :  { %7 = vsyncpa [#allocation4], 0  ;;  %s130_s6 = smov [#allocation2]   ;;  %s94_s10 = scalar_lea.hbm %s169_s0, 128 }
   0x2   :  { %s14_s7 = sshll.u32 %s130_s6, 4  ;;  %p95_p0 = scmp.ne.s32.totalorder %s169_s0, %s94_s10  ;;  %s15_s7 = int_to_ptr.vmem [resolvable:$true] %s14_s7 }
   0x3   :  { %p98_p1 = scmp.lt.u32.totalorder %s94_s10, %s169_s0 }
   0x5   :  { %p100_p2 = pnand %p98_p1, %p95_p0 }
   0x7   :  { %103 = shalt.err (!%p100_p2)
}
   0x8   :  { %s104_s15 = scalar_lea.vmem %s15_s7, 128  ;;  %p109_p4 = scmp.lt.s32.totalorder %s15_s7, %s15_s7 }
   0x9   :  { %p105_p3 = scmp.ne.s32.totalorder %s15_s7, %s104_s15  ;;  %p110_p5 = scmp.lt.s32.totalorder %s104_s15, %s104_s15 }
   0xb   :  { %p111_p6 = por %p110_p5, %p109_p4 }
   0xd   :  { %p112_p7 = pnand %p111_p6, %p105_p3 }
   0xf   :  { %115 = shalt.err (!%p112_p7)
}
  0x10   :  { %17 = dma.hbm_to_vmem [thread:$0]  %s169_s0, 128, %s15_s7, [#allocation3]  }
  0x11   :  { %126 = dma.done.wait [#allocation3], 128  }
  0x12   :  { %127 = vsyncadd [#allocation3], 4294967168  ;;  %v27_v0 = vld [vmem:[#allocation2] sm:$0xff]  ;;  %vm29_vm0 = vcmask 64512   ;;  %v42_v3 = vlaneseq  ;;  %vm56_vm2 = vcmask 7168   ;;  %s116_s21 = scalar_lea.hbm %s170_s1, 16 }
  0x13   :  { %v28_v1 = vmul.f32 14.285714, %v27_v0  ;;  %p117_p8 = scmp.ne.s32.totalorder %s170_s1, %s116_s21  ;;  %p120_p9 = scmp.lt.u32.totalorder %s116_s21, %s170_s1 }
  0x14   :  { %v43_v4 = vshrl.u32 %v42_v3, 7  ;;  %v45_v5 = vand.u32 127, %v42_v3 }
  0x15   :  { %v30_v2 = vsel %vm29_vm0, %v28_v1, -inf  ;;  %p122_p10 = pnand %p120_p9, %p117_p8 }
  0x16   :  { %31 = vmax.xlane.f32.xlu0 %v30_v2  ;;  %vm49_vm1 = vcmp.eq.s32.totalorder %v45_v5, %v43_v4 }
  0x17   :  { %v50_v6 = vsel %vm49_vm1, %v28_v1, 0.0 }
  0x18   :  { %v51_v7 = vsel %vm29_vm0, %v50_v6, 0.0 }
  0x19   :  { %52 = vadd.xlane.f32.xlu1 %v51_v7 }
  0xa3   :  { %v32_v8 = vpop.xlane.xlu0 %31 }
  0xa4   :  { %v33_v9 = vsub.f32 %v28_v1, %v32_v8 }
  0xa6   :  { %v34_v10 = vmul.f32 1.442695, %v33_v9  ;;  %v53_v16 = vpop.xlane.xlu1 %52 }
  0xa8   :  { %90 = vpow2.f32 %v34_v10 }
  0xb2   :  { %v91_v11 = vpop.eup %90 }
  0xb3   :  { %v36_v12 = vsel %vm29_vm0, %v91_v11, 0.0 }
  0xb4   :  { %37 = vadd.xlane.f32.xlu0 %v36_v12 }
 0x141   :  { %v38_v13 = vpop.xlane.xlu0 %37 }
 0x142   :  { %92 = vlog2.f32 %v38_v13 }
 0x14c   :  { %v93_v14 = vpop.eup %92 }
 0x14d   :  { %v40_v15 = vmul.f32 0.6931472, %v93_v14 }
 0x14f   :  { %v41_v17 = vadd.f32 %v40_v15, %v32_v8 }
 0x151   :  { %v54_v18 = vsub.f32 %v41_v17, %v53_v16 }
 0x153   :  { %v57_v19 = vsel %vm56_vm2, %v54_v18, 0.0 }
 0x154   :  { %58 = vadd.xlane.f32.xlu1 %v57_v19 }
 0x1e1   :  { %v59_v20 = vpop.xlane.xlu1 %58 }
 0x1e2   :  { %v60_v21 = vrot.slane %v59_v20, 4 }
 0x1e4   :  { %v61_v22 = vadd.f32 %v60_v21, %v59_v20 }
 0x1e6   :  { %v62_v23 = vrot.slane %v61_v22, 2 }
 0x1e8   :  { %v63_v24 = vadd.f32 %v62_v23, %v61_v22 }
 0x1ea   :  { %v64_v25 = vrot.slane %v63_v24, 1 }
 0x1ec   :  { %v65_v26 = vadd.f32 %v64_v25, %v63_v24 }
 0x1ee   :  { %85 = vpush %v65_v26 }
 0x21f   :  { %s86_s0 = spop %85 }
 0x220   :  { %s67_s18 = smul.f32 0.125, %s86_s0 }
 0x222   :  { %70 = sst [smem:[#allocation5]] %s67_s18 }
 0x223   :  { %125 = shalt.err (!%p122_p10)
}
 0x224   :  { %s131_s26 = smov [#allocation5]  }
 0x225   :  { %78 = dma.smem_to_hbm %s131_s26, 16, %s170_s1, [#allocation4]  }
 0x226   :  { %128 = dma.done.wait [#allocation4], 16  }
 0x227   :  { %129 = vsyncadd [#allocation4], 4294967280 }
 0x228   :  { %82 = sfence }
 0x229   :  { %83 = vsyncpa [#allocation3], 1 }
 0x22a   :  { %84 = vsyncpa [#allocation4], 1 }

</bundles_post_ra>
